<compile_context>
chip_gen: v6e
topology: v6e:2x2x1
jax: 0.10.0
libtpu: 0.0.40
codegen_flags: <defaults>
</compile_context>

<pallas_src>
import functools
import math

import jax
import jax.numpy as jnp
from jax import lax
from jax.experimental import pallas as pl
from jax.experimental.pallas import tpu as pltpu

_LOG2E = 1.4426950408889634


def _vmem_budget_bytes():
    """Per-generation VMEM ceiling, leaving >=25% headroom (v7x has 64 MiB per TensorCore)."""
    try:
        cap = int(pltpu.get_tpu_info().vmem_capacity_bytes)
    except Exception:  # hardware-info query only; never hides kernel lowering errors
        cap = 64 * 2 ** 20
    return (cap * 3) // 4


def _pick_tile(total, preferred):
    """Largest sublane-aligned tile <= preferred that divides `total` (else the full extent)."""
    if total <= preferred:
        return total
    for t in range(preferred, 7, -8):
        if total % t == 0:
            return t
    return total


# --------------------------- linear projection kernel: y = x @ W + b ---------------------------

def _linear_kernel(x_ref, w_ref, b_ref, o_ref, *, compute_dtype):
    # Cast fused into the kernel: avoids a separate XLA cast pass over the activations.
    x = x_ref[...].astype(compute_dtype)                                   # (tm, E)
    y = jnp.dot(x, w_ref[...], preferred_element_type=jnp.float32) + b_ref[...]
    o_ref[...] = y.astype(o_ref.dtype)


def _linear(x, w, b, *, out_dtype, compute_dtype, row_tile=256):
    """Tiled y = x @ W + b.  x: (M, E) any float dtype, W: (E, E) compute dtype, b: (1, E) f32."""
    M, E = x.shape
    tm = _pick_tile(M, row_tile)
    nrows = M // tm
    x_b = jnp.dtype(x.dtype).itemsize
    w_b = jnp.dtype(w.dtype).itemsize
    o_b = jnp.dtype(out_dtype).itemsize

    # Double-buffered row tiles + one constant-index weight (default double-buffered; a
    # single extra E^2 buffer fits the budget since each call holds exactly one weight).
    # TODO(synk): single-buffer the weight via pipeline_mode=pl.Buffered(1) to trim VMEM.
    est = 2 * tm * E * (x_b + o_b) + 2 * E * E * w_b + 2 * E * 4 + tm * E * 4
    vmem_limit = int(min(_vmem_budget_bytes(), max(32 * 2 ** 20, 2 * est)))
    cost = pl.CostEstimate(flops=int(2 * M * E * E), transcendentals=0,
                           bytes_accessed=int(M * E * (x_b + o_b) + E * E * w_b + E * 4))

    kernel = functools.partial(_linear_kernel, compute_dtype=compute_dtype)
    return pl.pallas_call(
        kernel,
        out_shape=jax.ShapeDtypeStruct((M, E), out_dtype),
        grid_spec=pltpu.PrefetchScalarGridSpec(
            num_scalar_prefetch=0,
            grid=(nrows,),
            in_specs=[pl.BlockSpec((tm, E), lambda i: (i, 0)),
                      pl.BlockSpec((E, E), lambda i: (0, 0)),
                      pl.BlockSpec((1, E), lambda i: (0, 0))],
            out_specs=pl.BlockSpec((tm, E), lambda i: (i, 0)),
        ),
        compiler_params=pltpu.CompilerParams(
            dimension_semantics=("parallel",),
            vmem_limit_bytes=vmem_limit),
        cost_estimate=cost,
    )(x, w, b)


# ----------------------------------- flash attention kernel -----------------------------------

def _flash_attention_kernel(q_ref, k_ref, v_ref, o_ref, m_scr, l_scr, acc_scr,
                            *, num_heads, head_dim):
    """Grid = (batch, q-tile, kv-tile); kv is the innermost (reduction) axis.

    Q already carries the 1/sqrt(head_dim) * log2(e) scale (folded into wq/bq), so the
    softmax uses exp2 directly with no per-step score multiply.
    """
    ki = pl.program_id(2)
    nk = pl.num_programs(2)

    @pl.when(ki == 0)
    def _init():
        m_scr[...] = jnp.full_like(m_scr, -jnp.inf)
        l_scr[...] = jnp.zeros_like(l_scr)
        acc_scr[...] = jnp.zeros_like(acc_scr)

    q = q_ref[0]                                                            # (tq, E)
    k = k_ref[0]                                                            # (tk, E)
    v = v_ref[0]                                                            # (tk, E)
    m_prev = m_scr[...]                                                     # (tq, H)
    l_prev = l_scr[...]                                                     # (tq, H)
    tq = q.shape[0]

    # Heads are static lane slices of E; per-step results are gathered and committed with a
    # single lane-dense (tq, E) store (no per-head masked read-modify-writes of acc_scr).
    # TODO(synk): for large num_heads switch to a lax.fori_loop variant to bound vreg live ranges.
    pv_parts, alpha_parts, m_cols, l_cols = [], [], [], []
    for h in range(num_heads):
        lo = h * head_dim
        hi = lo + head_dim
        # scores = q_h @ k_h^T via contraction on last dims (no explicit transpose).
        s = lax.dot_general(q[:, lo:hi], k[:, lo:hi], (((1,), (1,)), ((), ())),
                            preferred_element_type=jnp.float32)             # (tq, tk)
        m_prev_h = m_prev[:, h:h + 1]                                       # (tq, 1)
        m_new_h = jnp.maximum(m_prev_h, jnp.max(s, axis=-1, keepdims=True))
        alpha_h = jnp.exp2(m_prev_h - m_new_h)                              # (tq, 1)
        p = jnp.exp2(s - m_new_h)                                           # (tq, tk)
        pv_h = jnp.dot(p.astype(v.dtype), v[:, lo:hi],
                       preferred_element_type=jnp.float32)                  # (tq, D)
        m_cols.append(m_new_h)
        l_cols.append(alpha_h * l_prev[:, h:h + 1] + jnp.sum(p, axis=-1, keepdims=True))
        alpha_parts.append(jnp.broadcast_to(alpha_h, (tq, head_dim)))
        pv_parts.append(pv_h)

    alpha_full = jnp.concatenate(alpha_parts, axis=-1)                      # (tq, E)
    pv_full = jnp.concatenate(pv_parts, axis=-1)                            # (tq, E)
    acc_scr[...] = acc_scr[...] * alpha_full + pv_full                      # one full-lane store
    m_scr[...] = jnp.concatenate(m_cols, axis=-1)                           # (tq, H)
    l_scr[...] = jnp.concatenate(l_cols, axis=-1)                           # (tq, H)

    @pl.when(ki == nk - 1)
    def _finalize():
        inv_l = 1.0 / l_scr[...]                     # exact divide on the tiny (tq, H) denom
        inv_full = jnp.concatenate(
            [jnp.broadcast_to(inv_l[:, h:h + 1], (tq, head_dim)) for h in range(num_heads)],
            axis=-1)                                                        # (tq, E)
        o_ref[0] = (acc_scr[...] * inv_full).astype(o_ref.dtype)            # lane-dense store


def _flash_attention(qp, kp, vp, *, num_heads, q_tile, kv_tile):
    """qp/kp/vp: (B, T, E) projected (q already scaled), compute dtype.  Returns (B, T, E)."""
    B, T, E = qp.shape
    head_dim = E // num_heads
    tq, tk = q_tile, kv_tile
    nq, nk = T // tq, T // tk
    in_b = jnp.dtype(qp.dtype).itemsize

    # TODO(synk): on 128-MiB parts (v5e/v6e) and moderate T, cache the whole projected K/V
    # sequence in VMEM scratch to avoid the nq-fold K/V re-fetch from HBM.
    est = (2 * (tq + 2 * tk) * E * in_b            # double-buffered q/k/v tiles
           + 2 * tq * E * in_b                     # double-buffered output tile
           + tq * E * 4 + 2 * tq * 128 * 4)        # acc + (lane-padded) m/l scratch
    vmem_limit = int(min(_vmem_budget_bytes(), max(32 * 2 ** 20, 2 * est)))
    cost = pl.CostEstimate(
        flops=int(4 * B * T * T * E),
        transcendentals=int(B * num_heads * T * T),
        bytes_accessed=int(B * T * E * in_b * (1 + 2 * nq)    # Q once, K/V refetched per q-tile
                           + B * T * E * in_b),                # attended output
    )

    kernel = functools.partial(_flash_attention_kernel, num_heads=num_heads, head_dim=head_dim)
    return pl.pallas_call(
        kernel,
        out_shape=jax.ShapeDtypeStruct((B, T, E), qp.dtype),
        grid_spec=pltpu.PrefetchScalarGridSpec(
            num_scalar_prefetch=0,
            grid=(B, nq, nk),          # B*nq >= 2 exposes both v7x TensorCores
            in_specs=[pl.BlockSpec((1, tq, E), lambda b, qi, ki: (b, qi, 0)),
                      pl.BlockSpec((1, tk, E), lambda b, qi, ki: (b, ki, 0)),
                      pl.BlockSpec((1, tk, E), lambda b, qi, ki: (b, ki, 0))],
            out_specs=pl.BlockSpec((1, tq, E), lambda b, qi, ki: (b, qi, 0)),
            scratch_shapes=[
                pltpu.VMEM((tq, num_heads), jnp.float32),   # running max per head
                pltpu.VMEM((tq, num_heads), jnp.float32),   # running denom per head
                pltpu.VMEM((tq, E), jnp.float32),           # output accumulator
            ]),
        compiler_params=pltpu.CompilerParams(
            dimension_semantics=("parallel", "parallel", "arbitrary"),
            vmem_limit_bytes=vmem_limit),
        cost_estimate=cost,
    )(qp, kp, vp)


# ----------------------------------------- top level -----------------------------------------

def multi_head_attention(query, key, value, params, *, num_heads,
                         q_tile=None, kv_tile=None, compute_dtype=jnp.bfloat16):
    """query/key/value: (B, T, E).  params: dict of (E, E) weights and (1, E) biases."""
    B, T, E = query.shape
    assert E % num_heads == 0, "embed_dim must be divisible by num_heads"
    assert key.shape == (B, T, E) and value.shape == (B, T, E)
    head_dim = E // num_heads

    tq = q_tile or _pick_tile(T, 256)     # 256-wide tiles fill the v6e/v7x MXU output
    tk = kv_tile or _pick_tile(T, 512)
    assert T % tq == 0 and T % tk == 0, "tile sizes must divide the sequence length"
    out_dtype = query.dtype

    # Fold the softmax scale and log2(e) into the query projection (f32, one-time O(E^2)):
    # the flash kernel then uses exp2 with no per-step score multiply.
    qk_scale = _LOG2E / math.sqrt(head_dim)
    wq = (params["wq"] * qk_scale).astype(compute_dtype)
    bq = (params["bq"] * qk_scale).astype(jnp.float32)
    wk = params["wk"].astype(compute_dtype)
    bk = params["bk"].astype(jnp.float32)
    wv = params["wv"].astype(compute_dtype)
    bv = params["bv"].astype(jnp.float32)
    wo = params["wo"].astype(compute_dtype)
    bo = params["bo"].astype(jnp.float32)

    x2 = lambda t: t.reshape(B * T, E)
    # Q/K/V projections run ONCE (hoisted out of the flash kernel: no nq-fold reprojection);
    # the activation f32->compute_dtype cast happens inside the linear kernel.
    qp = _linear(x2(query), wq, bq, out_dtype=compute_dtype, compute_dtype=compute_dtype)
    kp = _linear(x2(key), wk, bk, out_dtype=compute_dtype, compute_dtype=compute_dtype)
    vp = _linear(x2(value), wv, bv, out_dtype=compute_dtype, compute_dtype=compute_dtype)

    attended = _flash_attention(qp.reshape(B, T, E), kp.reshape(B, T, E), vp.reshape(B, T, E),
                                num_heads=num_heads, q_tile=tq, kv_tile=tk)

    # Output projection in its own call: wo is not VMEM-resident during the attention grid.
    out = _linear(x2(attended), wo, bo, out_dtype=out_dtype, compute_dtype=compute_dtype)
    return out.reshape(B, T, E)


def _reference(query, key, value, params, *, num_heads):
    """Plain-JAX f32 mirror of the PyTorch forward, for the sanity check."""
    B, T, E = query.shape
    D = E // num_heads
    proj = lambda x, w, b: x @ w + b[0]
    Q = proj(query, params["wq"], params["bq"]).reshape(B, T, num_heads, D).transpose(0, 2, 1, 3)
    K = proj(key, params["wk"], params["bk"]).reshape(B, T, num_heads, D).transpose(0, 2, 1, 3)
    V = proj(value, params["wv"], params["bv"]).reshape(B, T, num_heads, D).transpose(0, 2, 1, 3)
    scores = jnp.einsum('bhqd,bhkd->bhqk', Q, K) / (D ** 0.5)
    attn = jax.nn.softmax(scores, axis=-1)
    out = jnp.einsum('bhqk,bhkd->bhqd', attn, V)
    out = out.transpose(0, 2, 1, 3).reshape(B, T, E)
    return proj(out, params["wo"], params["bo"])


if __name__ == "__main__":
    # Small but lane-dense demo shapes: E = 128 (full lane tile), T a multiple of 8.
    B, T, E, H = 2, 16, 128, 4          # head_dim = 32

    key0 = jax.random.PRNGKey(0)
    ks = jax.random.split(key0, 11)
    wscale = 1.0 / (E ** 0.5)

    params = {
        "wq": jax.random.normal(ks[0], (E, E), jnp.float32) * wscale,
        "bq": jax.random.normal(ks[1], (1, E), jnp.float32) * 0.01,
        "wk": jax.random.normal(ks[2], (E, E), jnp.float32) * wscale,
        "bk": jax.random.normal(ks[3], (1, E), jnp.float32) * 0.01,
        "wv": jax.random.normal(ks[4], (E, E), jnp.float32) * wscale,
        "bv": jax.random.normal(ks[5], (1, E), jnp.float32) * 0.01,
        "wo": jax.random.normal(ks[6], (E, E), jnp.float32) * wscale,
        "bo": jax.random.normal(ks[7], (1, E), jnp.float32) * 0.01,
    }
    query = jax.random.normal(ks[8], (B, T, E), jnp.float32)
    key_in = jax.random.normal(ks[9], (B, T, E), jnp.float32)
    value = jax.random.normal(ks[10], (B, T, E), jnp.float32)

    ref = _reference(query, key_in, value, params, num_heads=H)

    # f32 compute path: tight check of the kernel math (flash recurrence, heads, biases, exp2).
    out_f32 = multi_head_attention(query, key_in, value, params, num_heads=H,
                                   compute_dtype=jnp.float32)
    out_f32 = jax.block_until_ready(out_f32)
    assert out_f32.shape == (B, T, E)
    assert jnp.allclose(out_f32, ref, atol=2e-2, rtol=2e-2), \
        f"f32 kernel mismatch: max abs err {jnp.max(jnp.abs(out_f32 - ref))}"

    # bf16 MXU path: the performance configuration (f32 accumulation + f32 softmax stats).
    out_bf16 = multi_head_attention(query, key_in, value, params, num_heads=H,
                                    compute_dtype=jnp.bfloat16)
    out_bf16 = jax.block_until_ready(out_bf16)
    assert out_bf16.shape == (B, T, E)
    assert jnp.allclose(out_bf16, ref, atol=5e-2, rtol=5e-2), \
        f"bf16 kernel mismatch: max abs err {jnp.max(jnp.abs(out_bf16 - ref))}"

    print("KERNEL_OK")
</pallas_src>

<mosaic_0001>
module attributes {stable_mosaic.version = 11 : i64} {
  func.func @_linear_kernel(%arg0: i32, %arg1: memref<32x128xf32, #tpu.memory_space<vmem>>, %arg2: memref<128x128xf32, #tpu.memory_space<vmem>>, %arg3: memref<1x128xf32, #tpu.memory_space<vmem>>, %arg4: memref<32x128xf32, #tpu.memory_space<vmem>>) attributes {dimension_semantics = [#tpu.dimension_semantics<parallel>], iteration_bounds = array<i64: 1>, scalar_prefetch = 0 : i64, scratch_operands = 0 : i64, tpu.core_type = #tpu.core_type<tc>, window_params = [{transform_indices = @transform_0, window_bounds = array<i64: 32, 128>}, {pipeline_mode = #tpu.pipeline_mode<synchronous>, transform_indices = @transform_1, window_bounds = array<i64: 128, 128>}, {pipeline_mode = #tpu.pipeline_mode<synchronous>, transform_indices = @transform_2, window_bounds = array<i64: 1, 128>}, {transform_indices = @transform_3, window_bounds = array<i64: 32, 128>}]} {
    %c0 = arith.constant 0 : index
    %c0_0 = arith.constant 0 : index
    %0 = vector.load %arg1[%c0, %c0_0] : memref<32x128xf32, #tpu.memory_space<vmem>>, vector<32x128xf32>
    %c0_1 = arith.constant 0 : index
    %c0_2 = arith.constant 0 : index
    %1 = vector.load %arg2[%c0_1, %c0_2] : memref<128x128xf32, #tpu.memory_space<vmem>>, vector<128x128xf32>
    %cst = arith.constant dense<0.000000e+00> : vector<32x128xf32>
    %2 = tpu.matmul %0, %1, %cst {dimension_numbers = #tpu.dot_dimension_numbers<[1], [0], [0], [1], [0, 0, 1, 1], [], []>} : vector<32x128xf32>, vector<128x128xf32>, vector<32x128xf32> -> vector<32x128xf32>
    %c0_3 = arith.constant 0 : index
    %c0_4 = arith.constant 0 : index
    %3 = vector.load %arg3[%c0_3, %c0_4] : memref<1x128xf32, #tpu.memory_space<vmem>>, vector<1x128xf32>
    %4 = vector.broadcast %3 : vector<1x128xf32> to vector<32x128xf32>
    %5 = arith.addf %2, %4 : vector<32x128xf32>
    %c0_5 = arith.constant 0 : index
    %c0_6 = arith.constant 0 : index
    %6 = vector.load %arg4[%c0_5, %c0_6] : memref<32x128xf32, #tpu.memory_space<vmem>>, vector<32x128xf32>
    tpu.vector_store %arg4[%c0_5, %c0_6], %5 {strides = array<i32>} : memref<32x128xf32, #tpu.memory_space<vmem>>, vector<32x128xf32>,
    return
  }
  func.func @transform_0(%arg0: i32) -> (i32, i32) {
    %c0_i32 = arith.constant 0 : i32
    %c0_i32_0 = arith.constant 0 : i32
    return %arg0, %c0_i32 : i32, i32
  }
  func.func @transform_1(%arg0: i32) -> (i32, i32) {
    %c0_i32 = arith.constant 0 : i32
    %c0_i32_0 = arith.constant 0 : i32
    %c0_i32_1 = arith.constant 0 : i32
    return %c0_i32, %c0_i32_0 : i32, i32
  }
  func.func @transform_2(%arg0: i32) -> (i32, i32) {
    %c0_i32 = arith.constant 0 : i32
    %c0_i32_0 = arith.constant 0 : i32
    %c0_i32_1 = arith.constant 0 : i32
    return %c0_i32, %c0_i32_0 : i32, i32
  }
  func.func @transform_3(%arg0: i32) -> (i32, i32) {
    %c0_i32 = arith.constant 0 : i32
    %c0_i32_0 = arith.constant 0 : i32
    return %arg0, %c0_i32 : i32, i32
  }
}

</mosaic_0001>

<bundles_post_ra>
// kernel: tpu_custom_call.1
= control target key start
LH: loop header
LB: loop body
LE: loop exit
PB: predicated region body
PF: predicated region fallthrough
CT: control target
= control target key end

     0   :  { %8 = vsyncpa [#allocation3], 0  ;;  %s385_s0 = inlined_call_operand.hbm [shape: f32[32,128], index: 0, kind: input, shape index: {}]   ;;  %s386_s1 = inlined_call_operand.hbm [shape: f32[128,128], index: 1, kind: input, shape index: {}]   ;;  %s387_s2 = inlined_call_operand.vmem [shape: f32[1,128], index: 2, kind: input, shape index: {}]   ;;  %s388_s3 = inlined_call_operand.hbm [shape: f32[32,128], index: 3, kind: output, shape index: {}]  }
   0x1   :  { %9 = vsyncpa [#allocation6], 0 }
   0x2   :  { %10 = vsyncpa [#allocation4], 0  ;;  %s339_s12 = smov [#allocation2]  }
   0x3   :  { %s16_s13 = sshll.u32 %s339_s12, 4  ;;  %s17_s13 = int_to_ptr.vmem [resolvable:$true] %s16_s13 }
   0x4   :  { %s281_s14 = scalar_lea.vmem %s17_s13, 512  ;;  %p286_p1 = scmp.lt.s32.totalorder %s17_s13, %s17_s13 }
   0x5   :  { %p282_p0 = scmp.ne.s32.totalorder %s17_s13, %s281_s14  ;;  %p287_p2 = scmp.lt.s32.totalorder %s281_s14, %s281_s14 }
   0x7   :  { %p288_p3 = por %p287_p2, %p286_p1 }
   0x9   :  { %p289_p4 = pnand %p288_p3, %p282_p0 }
   0xb   :  { %292 = shalt.err (!%p289_p4)
}
   0xc   :  { %s340_s15 = smov 128   ;;  %s341_s16 = smov 8  }
   0xd   :  { %22 = dma.hbm_to_vmem [thread:$0]  %s385_s0, 512, %s17_s13, [#allocation3], %s340_s15, %s340_s15, %s341_s16  }
   0xe   :  { %s342_s19 = smov [#allocation5]  }
   0xf   :  { %s28_s20 = sshll.u32 %s342_s19, 4  ;;  %s29_s20 = int_to_ptr.vmem [resolvable:$true] %s28_s20 }
  0x10   :  { %s301_s21 = scalar_lea.vmem %s29_s20, 2048  ;;  %p306_p6 = scmp.lt.s32.totalorder %s29_s20, %s29_s20 }
  0x11   :  { %p302_p5 = scmp.ne.s32.totalorder %s29_s20, %s301_s21  ;;  %p307_p7 = scmp.lt.s32.totalorder %s301_s21, %s301_s21 }
  0x13   :  { %p308_p8 = por %p307_p7, %p306_p6 }
  0x15   :  { %p309_p9 = pnand %p308_p8, %p302_p5 }
  0x17   :  { %312 = shalt.err (!%p309_p9)
}
  0x18   :  { %34 = dma.hbm_to_vmem [thread:$0]  %s386_s1, 2048, %s29_s20, [#allocation6], %s340_s15, %s340_s15, %s341_s16  }
  0x19   :  { %333 = dma.done.wait [#allocation3], 512  }
  0x1a   :  { %334 = vsyncadd [#allocation3], 4294966784 }
  0x1b   :  { %335 = dma.done.wait [#allocation6], 2048  }
  0x1c   :  { %336 = vsyncadd [#allocation6], 4294965248  ;;  %v62_v0 = vld [vmem:[#allocation5 + $0x78] sm:$0xff]  ;;  %v61_v1 = vld [vmem:[#allocation5 + $0x70] sm:$0xff]  ;;  %s343_s24 = smov [#allocation7]  }
  0x1d   :  { %198 = vmatprep.subr.mxu0 %v62_v0  ;;  %236 = vmatprep.subr.mxu1 %v62_v0  ;;  %v60_v2 = vld [vmem:[#allocation5 + $0x68] sm:$0xff]  ;;  %v59_v3 = vld [vmem:[#allocation5 + $0x60] sm:$0xff]  ;;  %v58_v4 = vld [vmem:[#allocation5 + $0x58] sm:$0xff]  ;;  %s164_s25 = sshll.u32 %s343_s24, 4  ;;  %s165_s25 = int_to_ptr.vmem [resolvable:$true] %s164_s25 }
  0x1e   :  { %199 = vmatpush3.msra.mxu0 %v62_v0  ;;  %252 = vmatpush3.msra.mxu1 %v62_v0  ;;  %v57_v5 = vld [vmem:[#allocation5 + $0x50] sm:$0xff]  ;;  %v56_v6 = vld [vmem:[#allocation5 + $0x48] sm:$0xff]  ;;  %v55_v7 = vld [vmem:[#allocation5 + $0x40] sm:$0xff]  ;;  %s313_s26 = scalar_lea.vmem %s165_s25, 512  ;;  %p318_p11 = scmp.lt.s32.totalorder %s165_s25, %s165_s25 }
  0x1f   :  { %200 = vmatprep.subr.mxu0 %v61_v1  ;;  %237 = vmatprep.subr.mxu1 %v61_v1  ;;  %v54_v8 = vld [vmem:[#allocation5 + $0x38] sm:$0xff]  ;;  %v53_v9 = vld [vmem:[#allocation5 + $0x30] sm:$0xff]  ;;  %v52_v10 = vld [vmem:[#allocation5 + $0x28] sm:$0xff]  ;;  %p314_p10 = scmp.ne.s32.totalorder %s165_s25, %s313_s26  ;;  %p319_p12 = scmp.lt.s32.totalorder %s313_s26, %s313_s26 }
  0x20   :  { %201 = vmatpush3.msra.mxu0 %v61_v1  ;;  %253 = vmatpush3.msra.mxu1 %v61_v1  ;;  %v51_v11 = vld [vmem:[#allocation5 + $0x20] sm:$0xff]  ;;  %v50_v12 = vld [vmem:[#allocation5 + $0x18] sm:$0xff]  ;;  %v49_v13 = vld [vmem:[#allocation5 + $0x10] sm:$0xff] }
  0x21   :  { %202 = vmatprep.subr.mxu0 %v60_v2  ;;  %238 = vmatprep.subr.mxu1 %v60_v2  ;;  %v48_v14 = vld [vmem:[#allocation5 + $0x8] sm:$0xff]  ;;  %v47_v15 = vld [vmem:[#allocation5] sm:$0xff]  ;;  %v45_v17 = vld [vmem:[#allocation2 + $0x10] sm:$0xff]  ;;  %p320_p13 = por %p319_p12, %p318_p11 }
  0x22   :  { %203 = vmatpush3.msra.mxu0 %v60_v2  ;;  %254 = vmatpush3.msra.mxu1 %v60_v2  ;;  %v43_v16 = vld [vmem:[#allocation2] sm:$0xff]  ;;  %v44_v18 = vld [vmem:[#allocation2 + $0x8] sm:$0xff]  ;;  %v46_v19 = vld [vmem:[#allocation2 + $0x18] sm:$0xff] }
  0x23   :  { %204 = vmatprep.subr.mxu0 %v59_v3  ;;  %239 = vmatprep.subr.mxu1 %v59_v3  ;;  %v177_v20 = vld [vmem:[%s387_s2] ss:$0 sm:$0xff]  ;;  %p321_p0 = pnand %p320_p13, %p314_p10 }
  0x24   :  { %205 = vmatpush3.msra.mxu0 %v59_v3  ;;  %255 = vmatpush3.msra.mxu1 %v59_v3 }
  0x25   :  { %206 = vmatprep.subr.mxu0 %v58_v4  ;;  %240 = vmatprep.subr.mxu1 %v58_v4 }
  0x26   :  { %207 = vmatpush3.msra.mxu0 %v58_v4  ;;  %256 = vmatpush3.msra.mxu1 %v58_v4 }
  0x27   :  { %208 = vmatprep.subr.mxu0 %v57_v5  ;;  %241 = vmatprep.subr.mxu1 %v57_v5 }
  0x28   :  { %209 = vmatpush3.msra.mxu0 %v57_v5  ;;  %257 = vmatpush3.msra.mxu1 %v57_v5 }
  0x29   :  { %210 = vmatprep.subr.mxu0 %v56_v6  ;;  %242 = vmatprep.subr.mxu1 %v56_v6 }
  0x2a   :  { %211 = vmatpush3.msra.mxu0 %v56_v6  ;;  %258 = vmatpush3.msra.mxu1 %v56_v6 }
  0x2b   :  { %212 = vmatprep.subr.mxu0 %v55_v7  ;;  %243 = vmatprep.subr.mxu1 %v55_v7 }
  0x2c   :  { %213 = vmatpush3.msra.mxu0 %v55_v7  ;;  %259 = vmatpush3.msra.mxu1 %v55_v7 }
  0x2d   :  { %214 = vmatprep.subr.mxu0 %v54_v8  ;;  %244 = vmatprep.subr.mxu1 %v54_v8 }
  0x2e   :  { %215 = vmatpush3.msra.mxu0 %v54_v8  ;;  %260 = vmatpush3.msra.mxu1 %v54_v8 }
  0x2f   :  { %216 = vmatprep.subr.mxu0 %v53_v9  ;;  %245 = vmatprep.subr.mxu1 %v53_v9 }
  0x30   :  { %217 = vmatpush3.msra.mxu0 %v53_v9  ;;  %261 = vmatpush3.msra.mxu1 %v53_v9 }
  0x31   :  { %218 = vmatprep.subr.mxu0 %v52_v10  ;;  %246 = vmatprep.subr.mxu1 %v52_v10 }
  0x32   :  { %219 = vmatpush3.msra.mxu0 %v52_v10  ;;  %262 = vmatpush3.msra.mxu1 %v52_v10 }
  0x33   :  { %220 = vmatprep.subr.mxu0 %v51_v11  ;;  %247 = vmatprep.subr.mxu1 %v51_v11 }
  0x34   :  { %221 = vmatpush3.msra.mxu0 %v51_v11  ;;  %263 = vmatpush3.msra.mxu1 %v51_v11 }
  0x35   :  { %222 = vmatprep.subr.mxu0 %v50_v12  ;;  %248 = vmatprep.subr.mxu1 %v50_v12 }
  0x36   :  { %223 = vmatpush3.msra.mxu0 %v50_v12  ;;  %264 = vmatpush3.msra.mxu1 %v50_v12 }
  0x37   :  { %224 = vmatprep.subr.mxu0 %v49_v13  ;;  %249 = vmatprep.subr.mxu1 %v49_v13 }
  0x38   :  { %225 = vmatpush3.msra.mxu0 %v49_v13  ;;  %265 = vmatpush3.msra.mxu1 %v49_v13 }
  0x39   :  { %226 = vmatprep.subr.mxu0 %v48_v14  ;;  %250 = vmatprep.subr.mxu1 %v48_v14 }
  0x3a   :  { %227 = vmatpush3.msra.mxu0 %v48_v14  ;;  %266 = vmatpush3.msra.mxu1 %v48_v14 }
  0x3b   :  { %228 = vmatprep.subr.mxu0 %v47_v15  ;;  %251 = vmatprep.subr.mxu1 %v47_v15 }
  0x3c   :  { %229 = vmatpush3.msra.mxu0 %v47_v15  ;;  %267 = vmatpush3.msra.mxu1 %v47_v15 }
  0x3d   :  { %230 = vmatprep.mubr.f32.mxu0 %v43_v16  ;;  %233 = vmatprep.mubr.f32.mxu1 %v45_v17 }
  0x3e   :  { %231 = vmatmul.mubr.f32.vlgmr.msra.gmra.mxu0 %v44_v18  ;;  %234 = vmatmul.mubr.f32.vlgmr.msra.gmra.mxu1 %v46_v19 }
  0xfe   :  { %v232_v21 = vpop.f32.mrf.mxu0  ;;  %v235_v22 = vpop.f32.mrf.mxu1 }
  0xff   :  { %v142_v23 = vadd.f32 %v232_v21, %v177_v20  ;;  %v152_v24 = vadd.f32 %v235_v22, %v177_v20 }
 0x100   :  { %v136_v25 = vpop.f32.mrf.mxu0  ;;  %v146_v26 = vpop.f32.mrf.mxu1 }
 0x101   :  { %156 = vst [vmem:[#allocation7 + $0x8] sm:$0xff] %v142_v23  ;;  %158 = vst [vmem:[#allocation7 + $0x18] sm:$0xff] %v152_v24  ;;  %v137_v27 = vadd.f32 %v177_v20, %v136_v25  ;;  %v147_v28 = vadd.f32 %v177_v20, %v146_v26 }
 0x103   :  { %155 = vst [vmem:[#allocation7] sm:$0xff] %v137_v27  ;;  %157 = vst [vmem:[#allocation7 + $0x10] sm:$0xff] %v147_v28 }
 0x104   :  { %324 = shalt.err (!%p321_p0)
}
 0x105   :  { %170 = dma.vmem_to_hbm [thread:$0]  %s165_s25, 512, %s388_s3, [#allocation4], %s340_s15, %s340_s15, %s341_s16  }
 0x106   :  { %337 = dma.done.wait [#allocation4], 512  }
 0x107   :  { %338 = vsyncadd [#allocation4], 4294966784 }
 0x108   :  { %174 = vsyncpa [#allocation3], 1 }
 0x109   :  { %175 = vsyncpa [#allocation6], 1 }
 0x10a   :  { %176 = vsyncpa [#allocation4], 1 }

</bundles_post_ra>
